<compile_context>
chip_gen: v5e
topology: v5e:2x2
jax: 0.10.0
libtpu: 0.0.40
codegen_flags: <defaults>
</compile_context>

<pallas_src>
import jax
import jax.numpy as jnp
from jax.experimental import pallas as pl
from jax.experimental.pallas import tpu as pltpu

INPUT_SIZE = 4
HIDDEN = 64
OUTPUT_SIZE = 4


def policy_net_kernel(x_ref, w1_ref, b1_ref, w2_ref, b2_ref, w3_ref, b3_ref,
                      o_ref):
    # x_ref:  (TILE_B, INPUT_SIZE)   f32
    # w1_ref: (INPUT_SIZE, HIDDEN)   f32     b1_ref: (1, HIDDEN)      f32
    # w2_ref: (HIDDEN, HIDDEN)       bf16    b2_ref: (1, HIDDEN)      f32
    # w3_ref: (HIDDEN, OUTPUT_SIZE)  bf16    b3_ref: (1, OUTPUT_SIZE) f32
    # o_ref:  (TILE_B, OUTPUT_SIZE)  f32
    x = x_ref[...]
    w1 = w1_ref[...]

    # Layer 1 on the VPU: K=4 contraction as 4 unrolled broadcast FMAs
    # (an MXU pass would pad K to 128/256 and waste >96% of it).
    h1 = x[:, 0:1] * w1[0:1, :]
    for k in range(1, INPUT_SIZE):
        h1 = h1 + x[:, k:k + 1] * w1[k:k + 1, :]
    h1 = jnp.maximum(h1 + b1_ref[...], 0.0)

    # Layer 2 on the MXU: bf16 inputs, f32 accumulation.
    h2 = jnp.dot(h1.astype(jnp.bfloat16), w2_ref[...],
                 preferred_element_type=jnp.float32)
    h2 = jnp.maximum(h2 + b2_ref[...], 0.0)

    # Layer 3 on the MXU: bf16 inputs, f32 accumulation.
    logits = jnp.dot(h2.astype(jnp.bfloat16), w3_ref[...],
                     preferred_element_type=jnp.float32)
    logits = logits + b3_ref[...]

    # Numerically stable softmax with an exact divide so rows sum to 1
    # within f32 rounding (the approx reciprocal broke the sum tolerance).
    m = jnp.max(logits, axis=-1, keepdims=True)
    e = jnp.exp(logits - m)
    denom = jnp.sum(e, axis=-1, keepdims=True)
    o_ref[...] = (e / denom).astype(o_ref.dtype)


def _round_up(v, m):
    return (v + m - 1) // m * m


def _choose_tiles(B, tile_b):
    """Balanced tiles (minimize tail padding) and >=2 grid steps when possible
    so the 'parallel' batch axis shards across both v7x TensorCores."""
    B8 = _round_up(max(B, 1), 8)
    n = -(-B8 // tile_b)                 # cdiv
    if n == 1 and B8 >= 16:
        n = 2                            # keep the second TensorCore busy
    tb = _round_up(-(-B8 // n), 8)
    return tb, tb * n, n


def prepare_params(params):
    """One-time parameter prep (hoisted out of the per-step hot path).
    PyTorch Linear stores W as (out, in); transpose to (in, out) for x @ W.
    Layer-2/3 weights are pre-cast to bf16 for the MXU."""
    return {
        "w1": params["w1"].T.astype(jnp.float32),                    # (4, 64)
        "b1": params["b1"].reshape(1, HIDDEN).astype(jnp.float32),
        "w2": params["w2"].T.astype(jnp.bfloat16),                   # (64, 64)
        "b2": params["b2"].reshape(1, HIDDEN).astype(jnp.float32),
        "w3": params["w3"].T.astype(jnp.bfloat16),                   # (64, 4)
        "b3": params["b3"].reshape(1, OUTPUT_SIZE).astype(jnp.float32),
    }


def policy_network_forward(x, prepped, *, tile_b=2048):
    """x: (B, INPUT_SIZE) float32. prepped: output of prepare_params."""
    B = x.shape[0]
    tb, B_pad, n_tiles = _choose_tiles(B, tile_b)
    if B_pad != B:
        x = jnp.pad(x, ((0, B_pad - B), (0, 0)))

    batched = lambda feat: pl.BlockSpec((tb, feat), lambda i: (i, 0))
    resident = lambda shape: pl.BlockSpec(shape, lambda i: (0, 0))

    out = pl.pallas_call(
        policy_net_kernel,
        out_shape=jax.ShapeDtypeStruct((B_pad, OUTPUT_SIZE), jnp.float32),
        grid=(n_tiles,),
        in_specs=[
            batched(INPUT_SIZE),                   # x: pipelined over batch
            resident((INPUT_SIZE, HIDDEN)),        # weights stay VMEM-resident
            resident((1, HIDDEN)),
            resident((HIDDEN, HIDDEN)),
            resident((1, HIDDEN)),
            resident((HIDDEN, OUTPUT_SIZE)),
            resident((1, OUTPUT_SIZE)),
        ],
        out_specs=batched(OUTPUT_SIZE),
        compiler_params=pltpu.CompilerParams(
            dimension_semantics=("parallel",),      # megacore sharding on v7x
            vmem_limit_bytes=48 * 1024 * 1024,      # headroom above defaults
        ),
    )(x, prepped["w1"], prepped["b1"], prepped["w2"], prepped["b2"],
      prepped["w3"], prepped["b3"])

    return out if B_pad == B else out[:B]


def init_params(key):
    """Deterministic init matching PyTorch Linear shapes (out, in)."""
    ks = jax.random.split(key, 6)

    def lin_init(kw, kb, fan_in, fan_out):
        bound = 1.0 / jnp.sqrt(fan_in)
        w = jax.random.uniform(kw, (fan_out, fan_in), jnp.float32, -bound, bound)
        b = jax.random.uniform(kb, (fan_out,), jnp.float32, -bound, bound)
        return w, b

    w1, b1 = lin_init(ks[0], ks[1], INPUT_SIZE, HIDDEN)
    w2, b2 = lin_init(ks[2], ks[3], HIDDEN, HIDDEN)
    w3, b3 = lin_init(ks[4], ks[5], HIDDEN, OUTPUT_SIZE)
    return {"w1": w1, "b1": b1, "w2": w2, "b2": b2, "w3": w3, "b3": b3}


def reference_forward(x, params):
    """Exact f32 reference matching the PyTorch module."""
    h1 = jnp.maximum(x @ params["w1"].T + params["b1"], 0.0)
    h2 = jnp.maximum(h1 @ params["w2"].T + params["b2"], 0.0)
    logits = h2 @ params["w3"].T + params["b3"]
    return jax.nn.softmax(logits, axis=-1)


def reference_forward_matched(x, prepped):
    """Reference with the same bf16-input / f32-accumulate matmul precision."""
    h1 = jnp.maximum(x @ prepped["w1"] + prepped["b1"], 0.0)
    h2 = jnp.dot(h1.astype(jnp.bfloat16), prepped["w2"],
                 preferred_element_type=jnp.float32)
    h2 = jnp.maximum(h2 + prepped["b2"], 0.0)
    logits = jnp.dot(h2.astype(jnp.bfloat16), prepped["w3"],
                     preferred_element_type=jnp.float32) + prepped["b3"]
    return jax.nn.softmax(logits, axis=-1)


if __name__ == "__main__":
    key = jax.random.PRNGKey(0)
    kp, kx = jax.random.split(key)
    params = init_params(kp)
    prepped = prepare_params(params)

    # B=2: tiny batch; B=5: non-multiple-of-8 (padding path); B=16: two grid
    # steps (exercises the megacore 'parallel' split).
    for B in (2, 5, 16):
        x = jax.random.normal(jax.random.fold_in(kx, B), (B, INPUT_SIZE),
                              jnp.float32)
        out = jax.block_until_ready(policy_network_forward(x, prepped))
        assert out.shape == (B, OUTPUT_SIZE)

        ref_f32 = reference_forward(x, params)
        ref_bf16 = reference_forward_matched(x, prepped)
        # Same-precision reference: only accumulation-order differences.
        assert jnp.allclose(out, ref_bf16, atol=5e-3, rtol=5e-3), \
            "mismatch vs matched-precision reference"
        # f32 PyTorch-equivalent reference: bf16 MXU rounding ~1e-2.
        assert jnp.allclose(out, ref_f32, atol=2e-2, rtol=2e-2), \
            "mismatch vs f32 reference"
        # Exact divide -> rows sum to 1 within f32 rounding.
        assert jnp.allclose(jnp.sum(out, axis=-1), 1.0, atol=1e-3), \
            "softmax rows must sum to 1"

    print("KERNEL_OK")
</pallas_src>

<mosaic_0001>
module attributes {stable_mosaic.version = 11 : i64} {
  func.func @policy_net_kernel(%arg0: i32, %arg1: memref<8x4xf32, #tpu.memory_space<vmem>>, %arg2: memref<4x64xf32, #tpu.memory_space<vmem>>, %arg3: memref<1x64xf32, #tpu.memory_space<vmem>>, %arg4: memref<64x64xbf16, #tpu.memory_space<vmem>>, %arg5: memref<1x64xf32, #tpu.memory_space<vmem>>, %arg6: memref<64x4xbf16, #tpu.memory_space<vmem>>, %arg7: memref<1x4xf32, #tpu.memory_space<vmem>>, %arg8: memref<8x4xf32, #tpu.memory_space<vmem>>) attributes {dimension_semantics = [#tpu.dimension_semantics<parallel>], iteration_bounds = array<i64: 1>, scalar_prefetch = 0 : i64, scratch_operands = 0 : i64, tpu.core_type = #tpu.core_type<tc>, window_params = [{transform_indices = @transform_0, window_bounds = array<i64: 8, 4>}, {pipeline_mode = #tpu.pipeline_mode<synchronous>, transform_indices = @transform_1, window_bounds = array<i64: 4, 64>}, {pipeline_mode = #tpu.pipeline_mode<synchronous>, transform_indices = @transform_2, window_bounds = array<i64: 1, 64>}, {pipeline_mode = #tpu.pipeline_mode<synchronous>, transform_indices = @transform_3, window_bounds = array<i64: 64, 64>}, {pipeline_mode = #tpu.pipeline_mode<synchronous>, transform_indices = @transform_4, window_bounds = array<i64: 1, 64>}, {pipeline_mode = #tpu.pipeline_mode<synchronous>, transform_indices = @transform_5, window_bounds = array<i64: 64, 4>}, {pipeline_mode = #tpu.pipeline_mode<synchronous>, transform_indices = @transform_6, window_bounds = array<i64: 1, 4>}, {transform_indices = @transform_7, window_bounds = array<i64: 8, 4>}]} {
    %c0 = arith.constant 0 : index
    %c0_0 = arith.constant 0 : index
    %0 = vector.load %arg1[%c0, %c0_0] : memref<8x4xf32, #tpu.memory_space<vmem>>, vector<8x4xf32>
    %c0_1 = arith.constant 0 : index
    %c0_2 = arith.constant 0 : index
    %1 = vector.load %arg2[%c0_1, %c0_2] : memref<4x64xf32, #tpu.memory_space<vmem>>, vector<4x64xf32>
    %2 = vector.extract_strided_slice %0 {offsets = [0, 0], sizes = [8, 1], strides = [1, 1]} : vector<8x4xf32> to vector<8x1xf32>
    %3 = vector.extract_strided_slice %1 {offsets = [0, 0], sizes = [1, 64], strides = [1, 1]} : vector<4x64xf32> to vector<1x64xf32>
    %4 = vector.broadcast %2 : vector<8x1xf32> to vector<8x64xf32>
    %5 = vector.broadcast %3 : vector<1x64xf32> to vector<8x64xf32>
    %6 = arith.mulf %4, %5 : vector<8x64xf32>
    %7 = vector.extract_strided_slice %0 {offsets = [0, 1], sizes = [8, 1], strides = [1, 1]} : vector<8x4xf32> to vector<8x1xf32>
    %8 = vector.extract_strided_slice %1 {offsets = [1, 0], sizes = [1, 64], strides = [1, 1]} : vector<4x64xf32> to vector<1x64xf32>
    %9 = vector.broadcast %7 : vector<8x1xf32> to vector<8x64xf32>
    %10 = vector.broadcast %8 : vector<1x64xf32> to vector<8x64xf32>
    %11 = arith.mulf %9, %10 : vector<8x64xf32>
    %12 = arith.addf %6, %11 : vector<8x64xf32>
    %13 = vector.extract_strided_slice %0 {offsets = [0, 2], sizes = [8, 1], strides = [1, 1]} : vector<8x4xf32> to vector<8x1xf32>
    %14 = vector.extract_strided_slice %1 {offsets = [2, 0], sizes = [1, 64], strides = [1, 1]} : vector<4x64xf32> to vector<1x64xf32>
    %15 = vector.broadcast %13 : vector<8x1xf32> to vector<8x64xf32>
    %16 = vector.broadcast %14 : vector<1x64xf32> to vector<8x64xf32>
    %17 = arith.mulf %15, %16 : vector<8x64xf32>
    %18 = arith.addf %12, %17 : vector<8x64xf32>
    %19 = vector.extract_strided_slice %0 {offsets = [0, 3], sizes = [8, 1], strides = [1, 1]} : vector<8x4xf32> to vector<8x1xf32>
    %20 = vector.extract_strided_slice %1 {offsets = [3, 0], sizes = [1, 64], strides = [1, 1]} : vector<4x64xf32> to vector<1x64xf32>
    %21 = vector.broadcast %19 : vector<8x1xf32> to vector<8x64xf32>
    %22 = vector.broadcast %20 : vector<1x64xf32> to vector<8x64xf32>
    %23 = arith.mulf %21, %22 : vector<8x64xf32>
    %24 = arith.addf %18, %23 : vector<8x64xf32>
    %c0_3 = arith.constant 0 : index
    %c0_4 = arith.constant 0 : index
    %25 = vector.load %arg3[%c0_3, %c0_4] : memref<1x64xf32, #tpu.memory_space<vmem>>, vector<1x64xf32>
    %26 = vector.broadcast %25 : vector<1x64xf32> to vector<8x64xf32>
    %27 = arith.addf %24, %26 : vector<8x64xf32>
    %cst = arith.constant 0.000000e+00 : f32
    %28 = vector.broadcast %cst : f32 to vector<8x64xf32>
    %29 = arith.maximumf %27, %28 : vector<8x64xf32>
    %30 = arith.truncf %29 : vector<8x64xf32> to vector<8x64xbf16>
    %c0_5 = arith.constant 0 : index
    %c0_6 = arith.constant 0 : index
    %31 = vector.load %arg4[%c0_5, %c0_6] : memref<64x64xbf16, #tpu.memory_space<vmem>>, vector<64x64xbf16>
    %cst_7 = arith.constant dense<0.000000e+00> : vector<8x64xf32>
    %32 = tpu.matmul %30, %31, %cst_7 {dimension_numbers = #tpu.dot_dimension_numbers<[1], [0], [0], [1], [0, 0, 1, 1], [], []>} : vector<8x64xbf16>, vector<64x64xbf16>, vector<8x64xf32> -> vector<8x64xf32>
    %c0_8 = arith.constant 0 : index
    %c0_9 = arith.constant 0 : index
    %33 = vector.load %arg5[%c0_8, %c0_9] : memref<1x64xf32, #tpu.memory_space<vmem>>, vector<1x64xf32>
    %34 = vector.broadcast %33 : vector<1x64xf32> to vector<8x64xf32>
    %35 = arith.addf %32, %34 : vector<8x64xf32>
    %cst_10 = arith.constant 0.000000e+00 : f32
    %36 = vector.broadcast %cst_10 : f32 to vector<8x64xf32>
    %37 = arith.maximumf %35, %36 : vector<8x64xf32>
    %38 = arith.truncf %37 : vector<8x64xf32> to vector<8x64xbf16>
    %c0_11 = arith.constant 0 : index
    %c0_12 = arith.constant 0 : index
    %39 = vector.load %arg6[%c0_11, %c0_12] : memref<64x4xbf16, #tpu.memory_space<vmem>>, vector<64x4xbf16>
    %cst_13 = arith.constant dense<0.000000e+00> : vector<8x4xf32>
    %40 = tpu.matmul %38, %39, %cst_13 {dimension_numbers = #tpu.dot_dimension_numbers<[1], [0], [0], [1], [0, 0, 1, 1], [], []>} : vector<8x64xbf16>, vector<64x4xbf16>, vector<8x4xf32> -> vector<8x4xf32>
    %c0_14 = arith.constant 0 : index
    %c0_15 = arith.constant 0 : index
    %41 = vector.load %arg7[%c0_14, %c0_15] : memref<1x4xf32, #tpu.memory_space<vmem>>, vector<1x4xf32>
    %42 = vector.broadcast %41 : vector<1x4xf32> to vector<8x4xf32>
    %43 = arith.addf %40, %42 : vector<8x4xf32>
    %cst_16 = arith.constant dense<0xFF800000> : vector<8xf32>
    %44 = vector.multi_reduction <maximumf>, %43, %cst_16 [1] : vector<8x4xf32> to vector<8xf32>
    %45 = vector.shape_cast %44 : vector<8xf32> to vector<8x1xf32>
    %46 = vector.broadcast %45 : vector<8x1xf32> to vector<8x4xf32>
    %47 = arith.subf %43, %46 : vector<8x4xf32>
    %48 = math.exp %47 : vector<8x4xf32>
    %cst_17 = arith.constant dense<0.000000e+00> : vector<8xf32>
    %49 = vector.multi_reduction <add>, %48, %cst_17 [1] : vector<8x4xf32> to vector<8xf32>
    %50 = vector.shape_cast %49 : vector<8xf32> to vector<8x1xf32>
    %51 = vector.broadcast %50 : vector<8x1xf32> to vector<8x4xf32>
    %52 = arith.divf %48, %51 : vector<8x4xf32>
    %c0_18 = arith.constant 0 : index
    %c0_19 = arith.constant 0 : index
    %53 = vector.load %arg8[%c0_18, %c0_19] : memref<8x4xf32, #tpu.memory_space<vmem>>, vector<8x4xf32>
    tpu.vector_store %arg8[%c0_18, %c0_19], %52 {strides = array<i32>} : memref<8x4xf32, #tpu.memory_space<vmem>>, vector<8x4xf32>,
    return
  }
  func.func @transform_0(%arg0: i32) -> (i32, i32) {
    %c0_i32 = arith.constant 0 : i32
    %c0_i32_0 = arith.constant 0 : i32
    return %arg0, %c0_i32 : i32, i32
  }
  func.func @transform_1(%arg0: i32) -> (i32, i32) {
    %c0_i32 = arith.constant 0 : i32
    %c0_i32_0 = arith.constant 0 : i32
    %c0_i32_1 = arith.constant 0 : i32
    return %c0_i32, %c0_i32_0 : i32, i32
  }
  func.func @transform_2(%arg0: i32) -> (i32, i32) {
    %c0_i32 = arith.constant 0 : i32
    %c0_i32_0 = arith.constant 0 : i32
    %c0_i32_1 = arith.constant 0 : i32
    return %c0_i32, %c0_i32_0 : i32, i32
  }
  func.func @transform_3(%arg0: i32) -> (i32, i32) {
    %c0_i32 = arith.constant 0 : i32
    %c0_i32_0 = arith.constant 0 : i32
    %c0_i32_1 = arith.constant 0 : i32
    return %c0_i32, %c0_i32_0 : i32, i32
  }
  func.func @transform_4(%arg0: i32) -> (i32, i32) {
    %c0_i32 = arith.constant 0 : i32
    %c0_i32_0 = arith.constant 0 : i32
    %c0_i32_1 = arith.constant 0 : i32
    return %c0_i32, %c0_i32_0 : i32, i32
  }
  func.func @transform_5(%arg0: i32) -> (i32, i32) {
    %c0_i32 = arith.constant 0 : i32
    %c0_i32_0 = arith.constant 0 : i32
    %c0_i32_1 = arith.constant 0 : i32
    return %c0_i32, %c0_i32_0 : i32, i32
  }
  func.func @transform_6(%arg0: i32) -> (i32, i32) {
    %c0_i32 = arith.constant 0 : i32
    %c0_i32_0 = arith.constant 0 : i32
    %c0_i32_1 = arith.constant 0 : i32
    return %c0_i32, %c0_i32_0 : i32, i32
  }
  func.func @transform_7(%arg0: i32) -> (i32, i32) {
    %c0_i32 = arith.constant 0 : i32
    %c0_i32_0 = arith.constant 0 : i32
    return %arg0, %c0_i32 : i32, i32
  }
}

</mosaic_0001>

<bundles_post_ra>
// kernel: tpu_custom_call.1
= control target key start
LH: loop header
LB: loop body
LE: loop exit
PB: predicated region body
PF: predicated region fallthrough
CT: control target
= control target key end

     0   :  { %v259_v0 = vmov 0   ;;  %v260_v2 = vmov 2   ;;  %v261_v3 = vmov 1   ;;  %v262_v4 = vmov 3   ;;  %s348_s0 = inlined_call_operand.vmem [shape: f32[8,4], index: 0, kind: input, shape index: {}]   ;;  %s349_s2 = inlined_call_operand.vmem [shape: f32[1,64], index: 2, kind: input, shape index: {}]   ;;  %s350_s4 = inlined_call_operand.vmem [shape: f32[1,64], index: 4, kind: input, shape index: {}]   ;;  %s351_s3 = inlined_call_operand.vmem [shape: bf16[64,64], index: 3, kind: input, shape index: {}]   ;;  %s352_s5 = inlined_call_operand.vmem [shape: bf16[64,4], index: 5, kind: input, shape index: {}]   ;;  %s353_s1 = inlined_call_operand.vmem [shape: f32[4,64], index: 1, kind: input, shape index: {}]   ;;  %s354_s6 = inlined_call_operand.vmem [shape: f32[1,4], index: 6, kind: input, shape index: {}]   ;;  %s355_s7 = inlined_call_operand.vmem [shape: f32[8,4], index: 7, kind: output, shape index: {}]  }
   0x1   :  { %247 = vset.pattern.permute.xlu0 %v259_v0  ;;  %v27_v1 = vld [vmem:[%s348_s0] sm:$0xff]  ;;  %249 = vset.pattern.permute.xlu1 %v260_v2  ;;  %v238_v5 = vld [vmem:[%s351_s3 + $0x18] sm:$0xff]  ;;  %v237_v6 = vld [vmem:[%s351_s3 + $0x10] sm:$0xff]  ;;  %vm100_vm0 = vcmask 523264   ;;  %vm171_vm1 = vcmask 31744  }
   0x2   :  { %31 = vperm.xlu0 %247, %v27_v1   ;;  %44 = vperm.xlu1 %249, %v27_v1   ;;  %v236_v7 = vld [vmem:[%s351_s3 + $0x8] sm:$0xff]  ;;  %v235_v8 = vld [vmem:[%s351_s3] sm:$0xff]  ;;  %v242_v9 = vld [vmem:[%s352_s5 + $0x18] sm:$0xff] }
   0x3   :  { %108 = vmatpush.bf16.msra.mxu0 %v238_v5  ;;  %162 = vmatpush.bf16.msra.mxu1 %v242_v9  ;;  %v241_v10 = vld [vmem:[%s352_s5 + $0x10] sm:$0xff]  ;;  %v28_v13 = vld [vmem:[%s353_s1] sm:$0xf]  ;;  %v240_v31 = vld [vmem:[%s352_s5 + $0x8] sm:$0xff] }
   0x4   :  { %v34_v14 = vperm.slane %v28_v13, 0  ;;  %v40_v15 = vperm.slane %v28_v13, 1  ;;  %v47_v16 = vperm.slane %v28_v13, 2  ;;  %v54_v17 = vperm.slane %v28_v13, 3  ;;  %v252_v25 = vld [vmem:[%s349_s2] ss:$0 sm:$0xff] }
   0x5   :  { %v239_v32 = vld [vmem:[%s352_s5] sm:$0xff] }
   0x6   :  { %v253_v33 = vld [vmem:[%s350_s4] ss:$0 sm:$0xff] }
   0x7   :  { %109 = vmatpush.bf16.msra.mxu0 %v237_v6  ;;  %163 = vmatpush.bf16.msra.mxu1 %v241_v10  ;;  %v254_v39 = vld [vmem:[%s354_s6] ss:$0 sm:$0xff] }
   0xa   :  { %248 = vset.pattern.permute.xlu0 %v261_v3  ;;  %250 = vset.pattern.permute.xlu1 %v262_v4 }
   0xb   :  { %37 = vperm.xlu0 %248, %v27_v1   ;;  %51 = vperm.xlu1 %250, %v27_v1  }
   0xc   :  { %110 = vmatpush.bf16.msra.mxu0 %v236_v7  ;;  %164 = vmatpush.bf16.msra.mxu1 %v240_v31 }
  0x10   :  { %111 = vmatpush.bf16.msra.mxu0 %v235_v8  ;;  %165 = vmatpush.bf16.msra.mxu1 %v239_v32 }
  0x13   :  { %251 = vset.pattern.permute.xlu0 %v262_v4 }
  0x74   :  { %v32_v11 = vpop.permute.xlu0 %31  ;;  %v45_v12 = vpop.permute.xlu1 %44 }
  0x75   :  { %v35_v20 = vmul.f32 %v34_v14, %v32_v11  ;;  %v48_v22 = vmul.f32 %v47_v16, %v45_v12 }
  0x7d   :  { %v38_v18 = vpop.permute.xlu0 %37  ;;  %v52_v19 = vpop.permute.xlu1 %51 }
  0x7e   :  { %v41_v21 = vmul.f32 %v40_v15, %v38_v18  ;;  %v55_v24 = vmul.f32 %v54_v17, %v52_v19 }
  0x80   :  { %v42_v23 = vadd.f32 %v41_v21, %v35_v20 }
  0x82   :  { %v49_v26 = vadd.f32 %v48_v22, %v42_v23 }
  0x84   :  { %v56_v27 = vadd.f32 %v55_v24, %v49_v26 }
  0x86   :  { %v61_v28 = vadd.f32 %v252_v25, %v56_v27 }
  0x88   :  { %v62_v29 = vmax.f32 %v61_v28, 0.0 }
  0x8a   :  { %v63_v30 = vpack.c.bf16 %v62_v29, %v62_v29 }
  0x8c   :  { %217 = vmatmul.msk.bf16.vlgmr.msra.gmra.mxu0 %vm100_vm0, %v63_v30 }
 0x109   :  { %v113_v34 = vpop.f32.mrf.mxu0 }
 0x10a   :  { %v114_v35 = vadd.f32 %v253_v33, %v113_v34 }
 0x10c   :  { %v117_v36 = vmax.f32 %v114_v35, 0.0 }
 0x10e   :  { %v118_v37 = vpack.c.bf16 %v117_v36, %v117_v36 }
 0x110   :  { %234 = vmatmul.msk.bf16.vlgmr.msra.gmra.mxu1 %vm100_vm0, %v118_v37 }
 0x111   :  { %v115_v38 = vpop.f32.mrf.mxu0 }
 0x18d   :  { %v167_v40 = vpop.f32.mrf.mxu1 }
 0x18e   :  { %v168_v41 = vadd.f32 %v254_v39, %v167_v40 }
 0x190   :  { %v172_v42 = vsel %vm171_vm1, %v168_v41, -inf }
 0x191   :  { %173 = vmax.xlane.f32.xlu2 %v172_v42 }
 0x195   :  { %v169_v43 = vpop.f32.mrf.mxu1 }
 0x204   :  { %v174_v44 = vpop.xlane.xlu2 %173 }
 0x205   :  { %v175_v45 = vsub.f32 %v168_v41, %v174_v44 }
 0x207   :  { %v176_v46 = vmul.f32 1.442695, %v175_v45 }
 0x209   :  { %255 = vpow2.f32 %v176_v46 }
 0x20f   :  { %v256_v47 = vpop.eup %255 }
 0x210   :  { %v178_v48 = vsel %vm171_vm1, %v256_v47, 0.0 }
 0x211   :  { %179 = vadd.xlane.f32.xlu2 %v178_v48 }
 0x284   :  { %v180_v49 = vpop.xlane.xlu2 %179 }
 0x285   :  { %257 = vrcp.f32 %v180_v49  ;;  %v192_v53 = vand.u32 2147483648, %v180_v49  ;;  %v190_v55 = vand.u32 2147483647, %v180_v49  ;;  %vm186_vm3 = vweird.f32 %v180_v49 }
 0x287   :  { %v193_v57 = vor.u32 1.1754944e-38, %v192_v53  ;;  %vm191_vm5 = vcmp.eq.f32.partialorder %v190_v55, 8.507059e+37 }
 0x28b   :  { %v258_v50 = vpop.eup %257 }
 0x28c   :  { %v182_v51 = vmul.f32 %v258_v50, %v180_v49  ;;  %vm187_vm2 = vweird.f32 %v258_v50 }
 0x28d   :  { %vm188_vm4 = vmor %vm186_vm3, %vm187_vm2 }
 0x28e   :  { %v183_v52 = vsub.f32 1.0, %v182_v51 }
 0x290   :  { %v184_v54 = vmul.f32 %v258_v50, %v183_v52 }
 0x292   :  { %v185_v56 = vadd.f32 %v258_v50, %v184_v54 }
 0x294   :  { %v189_v58 = vsel %vm188_vm4, %v258_v50, %v185_v56 }
 0x295   :  { %v194_v59 = vsel %vm191_vm5, %v193_v57, %v189_v58 }
 0x296   :  { %v195_v60 = vmul.f32 %v256_v47, %v194_v59 }
 0x298   :  { %196 = vst.msk [vmem:[%s355_s7] sm:$0xff] %vm171_vm1, %v195_v60 }

</bundles_post_ra>
